<compile_context>
chip_gen: v7x
topology: tpu7x:2x2x1
jax: 0.10.0
libtpu: 0.0.40
codegen_flags: <defaults>
</compile_context>

<pallas_src>
import jax
import jax.numpy as jnp
from jax import lax
from jax.experimental import pallas as pl
from jax.experimental.pallas import tpu as pltpu

LANES = 128
SUBLANES = 8
TILE_ELEMS = SUBLANES * LANES          # 1024 elements = one f32 vreg
CHUNK_ROWS = 512                       # in-kernel compute chunk (256 KiB f32)
MAX_BLOCK_ROWS = 8192                  # (8192,128) f32 = 4 MiB DMA block / input
SMALL_ROWS = 2048                      # <= this: single full-array block
VMEM_LIMIT_BYTES = 40 * 1024 * 1024    # 2 inputs x 2 buffers x 4 MiB + headroom


def _make_mse_kernel(*, block_rows, chunk_rows, chunks_per_block,
                     valid_rows, needs_row_mask):
    """Builds the partial-sum kernel specialized on static tiling params."""

    folds = chunk_rows // SUBLANES

    def accumulate(base_row, x, t, acc_ref, masked):
        x = x.astype(jnp.float32)
        t = t.astype(jnp.float32)
        d = x - t
        sq = d * d
        if masked:
            row_ids = base_row + jax.lax.broadcasted_iota(jnp.int32, sq.shape, 0)
            sq = jnp.where(row_ids < valid_rows, sq, 0.0)
        # Fold (chunk_rows, 128) -> (8, 128): pure vreg elementwise adds;
        # the single cross-lane reduce is deferred to the wrapper.
        acc_ref[...] += jnp.sum(sq.reshape(folds, SUBLANES, LANES), axis=0)

    def kernel(x_ref, t_ref, acc_ref):
        i = pl.program_id(0)

        @pl.when(i == 0)
        def _():
            acc_ref[...] = jnp.zeros_like(acc_ref)

        def run_block(masked):
            def body():
                if chunks_per_block == 1:
                    accumulate(i * block_rows, x_ref[...], t_ref[...],
                               acc_ref, masked)
                else:
                    def chunk_body(c, carry):
                        r0 = pl.multiple_of(c * chunk_rows, chunk_rows)
                        accumulate(i * block_rows + r0,
                                   x_ref[pl.ds(r0, chunk_rows), :],
                                   t_ref[pl.ds(r0, chunk_rows), :],
                                   acc_ref, masked)
                        return carry
                    lax.fori_loop(0, chunks_per_block, chunk_body, 0)
            return body

        if needs_row_mask:
            # Only the last grid block can be partial: give every other block
            # an unmasked fast path (no iota/cmp/select VALU work).
            last = pl.num_programs(0) - 1
            pl.when(i < last)(run_block(False))
            pl.when(i == last)(run_block(True))
        else:
            run_block(False)()

    return kernel


def _mse_forward(x, target):
    """sum/mean of (x - target)^2 with the bulk reduction in Pallas."""
    assert x.shape == target.shape, (x.shape, target.shape)
    n_elems = x.size

    xf = jnp.ravel(x)
    tf = jnp.ravel(target)

    main = n_elems - (n_elems % TILE_ELEMS)   # kernel part (multiple of 1024)
    rem = n_elems - main                      # ragged tail (< 1024 elems)

    total = jnp.float32(0.0)
    if rem:
        # Tiny tail handled in plain jnp (no full-array pad copy).
        xt = xf[main:].astype(jnp.float32)
        tt = tf[main:].astype(jnp.float32)
        total = total + jnp.sum((xt - tt) * (xt - tt))

    if main:
        rows = main // LANES                  # multiple of 8 by construction
        # In the common aligned case (rem == 0) these reshapes are free.
        x2 = (xf[:main] if rem else xf).reshape(rows, LANES)
        t2 = (tf[:main] if rem else tf).reshape(rows, LANES)

        if rows <= SMALL_ROWS:
            block_rows = rows                 # full-dim block (allowed)
            chunk_rows = rows
            chunks_per_block = 1
            num_blocks = 1
            needs_row_mask = False
        else:
            chunk_rows = CHUNK_ROWS
            block_rows = min(MAX_BLOCK_ROWS, (rows // CHUNK_ROWS) * CHUNK_ROWS)
            chunks_per_block = block_rows // CHUNK_ROWS
            num_blocks = pl.cdiv(rows, block_rows)
            needs_row_mask = (rows % block_rows) != 0

        kernel = _make_mse_kernel(
            block_rows=block_rows,
            chunk_rows=chunk_rows,
            chunks_per_block=chunks_per_block,
            valid_rows=rows,
            needs_row_mask=needs_row_mask,
        )

        cost = pl.CostEstimate(
            flops=3 * main,
            transcendentals=0,
            bytes_accessed=int(2 * main * x.dtype.itemsize
                               + SUBLANES * LANES * 4),
        )

        partials = pl.pallas_call(
            kernel,
            out_shape=jax.ShapeDtypeStruct((SUBLANES, LANES), jnp.float32),
            grid=(num_blocks,),
            in_specs=[
                pl.BlockSpec((block_rows, LANES), lambda i: (i, 0)),
                pl.BlockSpec((block_rows, LANES), lambda i: (i, 0)),
            ],
            out_specs=pl.BlockSpec((SUBLANES, LANES), lambda i: (0, 0)),
            compiler_params=pltpu.CompilerParams(
                dimension_semantics=("arbitrary",),
                vmem_limit_bytes=VMEM_LIMIT_BYTES),
            cost_estimate=cost,
        )(x2, t2)

        # Single deferred cross-lane reduction of the vreg-shaped partials.
        total = total + jnp.sum(partials)

    return total / jnp.float32(n_elems)


@jax.custom_vjp
def mse_loss_pallas(x, target):
    """F.mse_loss(x, target) (mean reduction), forward reduction in Pallas."""
    return _mse_forward(x, target)


def _mse_fwd(x, target):
    return _mse_forward(x, target), (x, target)


def _mse_bwd(residuals, g):
    x, target = residuals
    diff = x.astype(jnp.float32) - target.astype(jnp.float32)
    scale = g * jnp.float32(2.0 / x.size)
    gx = (scale * diff).astype(x.dtype)
    gt = (-scale * diff).astype(target.dtype)
    return gx, gt


mse_loss_pallas.defvjp(_mse_fwd, _mse_bwd)


class AdainLoss:
    """JAX/Pallas port of the PyTorch AdainLoss module. Layout: NCHW."""

    def __init__(self, style_feature, content_feature):
        # torch .std() is unbiased (ddof=1); no zero-std guard, same as torch.
        cnt_mean = content_feature.mean(axis=(0, 2, 3), keepdims=True)
        cnt_std = content_feature.std(axis=(0, 2, 3), keepdims=True, ddof=1)
        sty_mean = style_feature.mean(axis=(0, 2, 3), keepdims=True)
        sty_std = style_feature.std(axis=(0, 2, 3), keepdims=True, ddof=1)
        self.target_feat = jax.lax.stop_gradient(
            (content_feature - cnt_mean) / cnt_std * sty_std + sty_mean)
        self.loss = None

    def __call__(self, x):
        # NOTE: storing the loss as an attribute mirrors the PyTorch module;
        # if this is called under jit, return the loss functionally instead.
        self.loss = mse_loss_pallas(x, self.target_feat)
        return x


if __name__ == "__main__":
    key = jax.random.PRNGKey(0)
    k_style, k_content, k_input, k_x2, k_t2 = jax.random.split(key, 5)

    # Primary test: small NCHW feature map, aligned (multiple of 1024 elems).
    N, C, H, W = 2, 4, 16, 16
    style_feature = jax.random.normal(k_style, (N, C, H, W), jnp.float32)
    content_feature = jax.random.normal(k_content, (N, C, H, W), jnp.float32)
    x = jax.random.normal(k_input, (N, C, H, W), jnp.float32)

    module = AdainLoss(style_feature, content_feature)
    out = module(x)

    out = jax.block_until_ready(out)
    loss = jax.block_until_ready(module.loss)

    ref_loss = jnp.mean((x - module.target_feat) ** 2)
    assert jnp.allclose(loss, ref_loss, rtol=1e-5, atol=1e-6), (loss, ref_loss)
    assert jnp.array_equal(out, x)          # forward returns its input

    # Secondary test: element count not a multiple of 1024 (kernel + jnp tail).
    xu = jax.random.normal(k_x2, (2, 5, 16, 16), jnp.float32)   # 2560 elements
    tu = jax.random.normal(k_t2, (2, 5, 16, 16), jnp.float32)
    loss_u = jax.block_until_ready(mse_loss_pallas(xu, tu))
    ref_u = jnp.mean((xu - tu) ** 2)
    assert jnp.allclose(loss_u, ref_u, rtol=1e-5, atol=1e-6), (loss_u, ref_u)

    print("KERNEL_OK")
</pallas_src>

<mosaic_0001>
module attributes {stable_mosaic.version = 11 : i64} {
  func.func @kernel(%arg0: i32, %arg1: memref<16x128xf32, #tpu.memory_space<vmem>>, %arg2: memref<16x128xf32, #tpu.memory_space<vmem>>, %arg3: memref<8x128xf32, #tpu.memory_space<vmem>>) attributes {dimension_semantics = [#tpu.dimension_semantics<arbitrary>], iteration_bounds = array<i64: 1>, scalar_prefetch = 0 : i64, scratch_operands = 0 : i64, tpu.core_type = #tpu.core_type<tc>, window_params = [{transform_indices = @transform_0, window_bounds = array<i64: 16, 128>}, {transform_indices = @transform_1, window_bounds = array<i64: 16, 128>}, {pipeline_mode = #tpu.pipeline_mode<synchronous>, transform_indices = @transform_2, window_bounds = array<i64: 8, 128>}]} {
    %c0_i32 = arith.constant 0 : i32
    %0 = arith.cmpi eq, %arg0, %c0_i32 : i32
    %1 = arith.extui %0 : i1 to i32
    %c0_i32_0 = arith.constant 0 : i32
    %2 = arith.cmpi ne, %1, %c0_i32_0 : i32
    scf.if %2 {
      %cst_8 = arith.constant 0.000000e+00 : f32
      %12 = vector.broadcast %cst_8 : f32 to vector<8x128xf32>
      %c0_9 = arith.constant 0 : index
      %c0_10 = arith.constant 0 : index
      %13 = vector.load %arg3[%c0_9, %c0_10] : memref<8x128xf32, #tpu.memory_space<vmem>>, vector<8x128xf32>
      tpu.vector_store %arg3[%c0_9, %c0_10], %12 {strides = array<i32>} : memref<8x128xf32, #tpu.memory_space<vmem>>, vector<8x128xf32>,
    } else {
    }
    %c0 = arith.constant 0 : index
    %c0_1 = arith.constant 0 : index
    %3 = vector.load %arg1[%c0, %c0_1] : memref<16x128xf32, #tpu.memory_space<vmem>>, vector<16x128xf32>
    %c0_2 = arith.constant 0 : index
    %c0_3 = arith.constant 0 : index
    %4 = vector.load %arg2[%c0_2, %c0_3] : memref<16x128xf32, #tpu.memory_space<vmem>>, vector<16x128xf32>
    %5 = arith.subf %3, %4 : vector<16x128xf32>
    %6 = arith.mulf %5, %5 : vector<16x128xf32>
    %c0_4 = arith.constant 0 : index
    %c0_5 = arith.constant 0 : index
    %7 = vector.load %arg3[%c0_4, %c0_5] : memref<8x128xf32, #tpu.memory_space<vmem>>, vector<8x128xf32>
    %8 = vector.shape_cast %6 : vector<16x128xf32> to vector<2x8x128xf32>
    %cst = arith.constant dense<0.000000e+00> : vector<8x128xf32>
    %9 = vector.multi_reduction <add>, %8, %cst [0] : vector<2x8x128xf32> to vector<8x128xf32>
    %10 = arith.addf %7, %9 : vector<8x128xf32>
    %c0_6 = arith.constant 0 : index
    %c0_7 = arith.constant 0 : index
    %11 = vector.load %arg3[%c0_6, %c0_7] : memref<8x128xf32, #tpu.memory_space<vmem>>, vector<8x128xf32>
    tpu.vector_store %arg3[%c0_6, %c0_7], %10 {strides = array<i32>} : memref<8x128xf32, #tpu.memory_space<vmem>>, vector<8x128xf32>,
    return
  }
  func.func @transform_0(%arg0: i32) -> (i32, i32) {
    %c0_i32 = arith.constant 0 : i32
    %c0_i32_0 = arith.constant 0 : i32
    return %arg0, %c0_i32 : i32, i32
  }
  func.func @transform_1(%arg0: i32) -> (i32, i32) {
    %c0_i32 = arith.constant 0 : i32
    %c0_i32_0 = arith.constant 0 : i32
    return %arg0, %c0_i32 : i32, i32
  }
  func.func @transform_2(%arg0: i32) -> (i32, i32) {
    %c0_i32 = arith.constant 0 : i32
    %c0_i32_0 = arith.constant 0 : i32
    %c0_i32_1 = arith.constant 0 : i32
    return %c0_i32, %c0_i32_0 : i32, i32
  }
}

</mosaic_0001>

<bundles_post_ra>
// kernel: tpu_custom_call.1
= control target key start
LH: loop header
LB: loop body
LE: loop exit
PB: predicated region body
PF: predicated region fallthrough
CT: control target
= control target key end

     0   :  { %7 = vsyncpa [#allocation3], 0  ;;  %s207_s0 = inlined_call_operand.hbm [shape: f32[16,128], index: 0, kind: input, shape index: {}]   ;;  %s208_s1 = inlined_call_operand.hbm [shape: f32[16,128], index: 1, kind: input, shape index: {}]   ;;  %s209_s2 = inlined_call_operand.hbm [shape: f32[8,128], index: 2, kind: output, shape index: {}]  }
   0x1   :  { %8 = vsyncpa [#allocation6], 0 }
   0x2   :  { %9 = vsyncpa [#allocation4], 0  ;;  %s151_s9 = smov [#allocation2]   ;;  %s79_s13 = scalar_lea.hbm %s207_s0, 256 }
   0x3   :  { %s15_s10 = sshll.u32 %s151_s9, 4  ;;  %p80_p0 = scmp.ne.s32.totalorder %s207_s0, %s79_s13  ;;  %s16_s10 = int_to_ptr.vmem [resolvable:$true] %s15_s10 }
   0x4   :  { %p83_p1 = scmp.lt.u32.totalorder %s79_s13, %s207_s0 }
   0x6   :  { %p85_p2 = pnand %p83_p1, %p80_p0 }
   0x8   :  { %88 = shalt.err (!%p85_p2)
}
   0x9   :  { %s89_s18 = scalar_lea.vmem %s16_s10, 256  ;;  %p94_p4 = scmp.lt.s32.totalorder %s16_s10, %s16_s10 }
   0xa   :  { %p90_p3 = scmp.ne.s32.totalorder %s16_s10, %s89_s18  ;;  %p95_p5 = scmp.lt.s32.totalorder %s89_s18, %s89_s18 }
   0xc   :  { %p96_p6 = por %p95_p5, %p94_p4 }
   0xe   :  { %p97_p7 = pnand %p96_p6, %p90_p3 }
  0x10   :  { %100 = shalt.err (!%p97_p7)
}
  0x11   :  { %s152_s19 = smov 128   ;;  %s153_s20 = smov 8  }
  0x12   :  { %21 = dma.hbm_to_vmem [thread:$0]  %s207_s0, 256, %s16_s10, [#allocation3], %s152_s19, %s152_s19, %s153_s20  }
  0x13   :  { %s154_s23 = smov [#allocation5]   ;;  %s101_s27 = scalar_lea.hbm %s208_s1, 256 }
  0x14   :  { %s27_s24 = sshll.u32 %s154_s23, 4  ;;  %p102_p8 = scmp.ne.s32.totalorder %s208_s1, %s101_s27  ;;  %s28_s24 = int_to_ptr.vmem [resolvable:$true] %s27_s24 }
  0x15   :  { %p105_p9 = scmp.lt.u32.totalorder %s101_s27, %s208_s1 }
  0x17   :  { %p107_p10 = pnand %p105_p9, %p102_p8 }
  0x19   :  { %110 = shalt.err (!%p107_p10)
}
  0x1a   :  { %s111_s4 = scalar_lea.vmem %s28_s24, 256  ;;  %p116_p12 = scmp.lt.s32.totalorder %s28_s24, %s28_s24 }
  0x1b   :  { %p112_p11 = scmp.ne.s32.totalorder %s28_s24, %s111_s4  ;;  %p117_p13 = scmp.lt.s32.totalorder %s111_s4, %s111_s4 }
  0x1d   :  { %p118_p0 = por %p117_p13, %p116_p12 }
  0x1f   :  { %p119_p1 = pnand %p118_p0, %p112_p11 }
  0x21   :  { %122 = shalt.err (!%p119_p1)
}
  0x22   :  { %33 = dma.hbm_to_vmem [thread:$0]  %s208_s1, 256, %s28_s24, [#allocation6], %s152_s19, %s152_s19, %s153_s20  }
  0x23   :  { %145 = dma.done.wait [#allocation3], 256  }
  0x24   :  { %146 = vsyncadd [#allocation3], 4294967040 }
  0x25   :  { %147 = dma.done.wait [#allocation6], 256  }
  0x26   :  { %148 = vsyncadd [#allocation6], 4294967040  ;;  %v45_v0 = vld [vmem:[#allocation2] sm:$0xff]  ;;  %v46_v1 = vld [vmem:[#allocation2 + $0x8] sm:$0xff]  ;;  %s155_s6 = smov [#allocation7]  }
  0x27   :  { %v47_v2 = vld [vmem:[#allocation5] sm:$0xff]  ;;  %v48_v3 = vld [vmem:[#allocation5 + $0x8] sm:$0xff]  ;;  %s63_s7 = sshll.u32 %s155_s6, 4  ;;  %s64_s7 = int_to_ptr.vmem [resolvable:$true] %s63_s7 }
  0x28   :  { %v49_v4 = vsub.f32 %v45_v0, %v47_v2  ;;  %v50_v5 = vsub.f32 %v46_v1, %v48_v3  ;;  %s123_s8 = scalar_lea.vmem %s64_s7, 128  ;;  %p128_p3 = scmp.lt.s32.totalorder %s64_s7, %s64_s7 }
  0x29   :  { %p124_p2 = scmp.ne.s32.totalorder %s64_s7, %s123_s8  ;;  %p129_p4 = scmp.lt.s32.totalorder %s123_s8, %s123_s8 }
  0x2a   :  { %v51_v6 = vmul.f32 %v49_v4, %v49_v4  ;;  %v52_v7 = vmul.f32 %v50_v5, %v50_v5 }
  0x2b   :  { %p130_p5 = por %p129_p4, %p128_p3 }
  0x2c   :  { %v54_v8 = vadd.f32 %v52_v7, %v51_v6 }
  0x2d   :  { %p131_p6 = pnand %p130_p5, %p124_p2 }
  0x2e   :  { %56 = vst [vmem:[#allocation7] sm:$0xff] %v54_v8 }
  0x2f   :  { %134 = shalt.err (!%p131_p6)
}
  0x30   :  { %s135_s10 = scalar_lea.hbm %s209_s2, 128 }
  0x31   :  { %p136_p7 = scmp.ne.s32.totalorder %s209_s2, %s135_s10  ;;  %p139_p8 = scmp.lt.u32.totalorder %s135_s10, %s209_s2 }
  0x33   :  { %p141_p9 = pnand %p139_p8, %p136_p7 }
  0x35   :  { %144 = shalt.err (!%p141_p9)
}
  0x36   :  { %66 = dma.vmem_to_hbm [thread:$0]  %s64_s7, 128, %s209_s2, [#allocation4]  }
  0x37   :  { %149 = dma.done.wait [#allocation4], 128  }
  0x38   :  { %150 = vsyncadd [#allocation4], 4294967168 }
  0x39   :  { %70 = vsyncpa [#allocation3], 1 }
  0x3a   :  { %71 = vsyncpa [#allocation6], 1 }
  0x3b   :  { %72 = vsyncpa [#allocation4], 1 }

</bundles_post_ra>
